<compile_context>
chip_gen: v7x
topology: tpu7x:2x2x1
jax: 0.10.0
libtpu: 0.0.40
codegen_flags: <defaults>
</compile_context>

<pallas_src>
import math

import jax
import jax.numpy as jnp
from jax.experimental import pallas as pl
from jax.experimental.pallas import tpu as pltpu


_SMALL_BYTES = 2 * 1024 * 1024       # whole-problem-in-one-block threshold
_TARGET_OUT_BLOCK_BYTES = 2 * 1024 * 1024  # ~2 MiB output tile per grid step


def _vpu_linear2_kernel(x_ref, w_ref, b_ref, o_ref):
    # x_ref: (rows, 2), w_ref: (2, embed_dim), b_ref: (1, embed_dim)
    # K=2 contraction done on the VPU: two broadcast-mults + adds per vreg.
    x = x_ref[...]
    w = w_ref[...]
    o_ref[...] = (
        x[:, 0:1] * w[0:1, :] + x[:, 1:2] * w[1:2, :] + b_ref[...]
    ).astype(o_ref.dtype)


def _folded_matmul_kernel(x_ref, w_ref, b_ref, o_ref):
    # Lane-dense folded form:
    # x_ref: (tile_rows, 2*fold), w_ref: (2*fold, 128), b_ref: (1, 128)
    o_ref[...] = (
        jnp.dot(x_ref[...], w_ref[...], preferred_element_type=jnp.float32)
        + b_ref[...]
    ).astype(o_ref.dtype)


def _cost(n_rows, embed_dim):
    return pl.CostEstimate(
        flops=4 * n_rows * embed_dim,
        transcendentals=0,
        bytes_accessed=4 * (n_rows * 2 + 3 * embed_dim + n_rows * embed_dim),
    )


def node_embedding(x, weight, bias, *, tile_n=None):
    """x: (N, 2) f32, weight: (embed_dim, 2) [PyTorch layout], bias: (embed_dim,)."""
    n, in_dim = x.shape
    embed_dim, in_dim_w = weight.shape
    assert in_dim == 2 and in_dim_w == 2

    w_t = weight.T                    # (2, embed_dim)
    b2d = bias.reshape(1, embed_dim)  # (1, embed_dim)

    # ---- Small-problem fast path: one whole-array block, no grid, no padding.
    if 4 * n * (2 + embed_dim) <= _SMALL_BYTES:
        return pl.pallas_call(
            _vpu_linear2_kernel,
            out_shape=jax.ShapeDtypeStruct((n, embed_dim), x.dtype),
            cost_estimate=_cost(n, embed_dim),
        )(x, w_t, b2d)

    # ---- Large path: tiled over rows.
    # Lane-dense folding when embed_dim divides 128.
    can_fold = embed_dim < 128 and (128 % embed_dim == 0)
    fold = 128 // embed_dim if can_fold else 1
    out_width = embed_dim * fold      # 128 when folded, else embed_dim

    # Tile sizing: ~2 MiB output block, at least 2 grid steps (v7x megacore),
    # row tile a multiple of 8 sublanes.
    if tile_n is None:
        target_rows = max(8, _TARGET_OUT_BLOCK_BYTES // (4 * out_width))
    else:
        target_rows = max(8, tile_n // fold)
    n_rows = pl.cdiv(n, fold)                       # folded row count (pre-pad)
    grid_steps = max(2, pl.cdiv(n_rows, target_rows))
    tile_rows = pl.cdiv(pl.cdiv(n_rows, grid_steps), 8) * 8
    n_rows_pad = grid_steps * tile_rows
    n_pad = n_rows_pad * fold

    if n_pad != n:
        # Padded rows compute to bias and are sliced off below.
        x = jnp.pad(x, ((0, n_pad - n), (0, 0)))

    if fold > 1:
        x_k = x.reshape(n_rows_pad, 2 * fold)                    # free reshape
        w_k = jnp.kron(jnp.eye(fold, dtype=w_t.dtype), w_t)      # (2*fold, 128)
        b_k = jnp.tile(b2d, (1, fold))                           # (1, 128)
        kernel = _folded_matmul_kernel
    else:
        x_k = x
        w_k = w_t
        b_k = b2d
        kernel = _vpu_linear2_kernel

    out = pl.pallas_call(
        kernel,
        out_shape=jax.ShapeDtypeStruct((n_rows_pad, out_width), x.dtype),
        grid=(grid_steps,),
        in_specs=[
            pl.BlockSpec((tile_rows, 2 * fold), lambda i: (i, 0)),
            pl.BlockSpec((2 * fold, out_width), lambda i: (0, 0)),
            pl.BlockSpec((1, out_width), lambda i: (0, 0)),
        ],
        out_specs=pl.BlockSpec((tile_rows, out_width), lambda i: (i, 0)),
        compiler_params=pltpu.CompilerParams(
            dimension_semantics=("parallel",),
        ),
        cost_estimate=_cost(n_pad, embed_dim),
    )(x_k, w_k, b_k)

    # Reshape back to (n_pad, embed_dim) (contiguous, free) and drop padding.
    return out.reshape(n_pad, embed_dim)[:n]


if __name__ == "__main__":
    embed_dim = 32

    key = jax.random.PRNGKey(0)
    k_x, k_w, k_b, k_x2 = jax.random.split(key, 4)

    # Deterministic parameter init mimicking nn.Linear default:
    # U(-1/sqrt(in_features), 1/sqrt(in_features)) with in_features = 2.
    bound = 1.0 / math.sqrt(2.0)
    weight = jax.random.uniform(
        k_w, (embed_dim, 2), minval=-bound, maxval=bound, dtype=jnp.float32
    )
    bias = jax.random.uniform(
        k_b, (embed_dim,), minval=-bound, maxval=bound, dtype=jnp.float32
    )

    # 1) Spec-sized case (num_items x 2): exercises the small single-block path.
    num_items = 8
    x = jax.random.normal(k_x, (num_items, 2), dtype=jnp.float32)
    out = jax.block_until_ready(node_embedding(x, weight, bias))
    ref = x @ weight.T + bias
    assert out.shape == (num_items, embed_dim)
    assert jnp.allclose(out, ref, atol=1e-5, rtol=1e-5)

    # 2) Larger case: exercises the tiled, lane-dense (folded) path.
    num_items_big = 24000
    x_big = jax.random.normal(k_x2, (num_items_big, 2), dtype=jnp.float32)
    out_big = jax.block_until_ready(node_embedding(x_big, weight, bias))
    ref_big = x_big @ weight.T + bias
    assert out_big.shape == (num_items_big, embed_dim)
    assert jnp.allclose(out_big, ref_big, atol=1e-5, rtol=1e-5)

    print("KERNEL_OK")
</pallas_src>

<mosaic_0001>
module attributes {stable_mosaic.version = 11 : i64} {
  func.func @_vpu_linear2_kernel(%arg0: memref<8x2xf32, #tpu.memory_space<vmem>>, %arg1: memref<2x32xf32, #tpu.memory_space<vmem>>, %arg2: memref<1x32xf32, #tpu.memory_space<vmem>>, %arg3: memref<8x32xf32, #tpu.memory_space<vmem>>) attributes {dimension_semantics = [], scalar_prefetch = 0 : i64, scratch_operands = 0 : i64, tpu.core_type = #tpu.core_type<tc>} {
    %c0 = arith.constant 0 : index
    %c0_0 = arith.constant 0 : index
    %0 = vector.load %arg0[%c0, %c0_0] : memref<8x2xf32, #tpu.memory_space<vmem>>, vector<8x2xf32>
    %c0_1 = arith.constant 0 : index
    %c0_2 = arith.constant 0 : index
    %1 = vector.load %arg1[%c0_1, %c0_2] : memref<2x32xf32, #tpu.memory_space<vmem>>, vector<2x32xf32>
    %2 = vector.extract_strided_slice %0 {offsets = [0, 0], sizes = [8, 1], strides = [1, 1]} : vector<8x2xf32> to vector<8x1xf32>
    %3 = vector.extract_strided_slice %1 {offsets = [0, 0], sizes = [1, 32], strides = [1, 1]} : vector<2x32xf32> to vector<1x32xf32>
    %4 = vector.broadcast %2 : vector<8x1xf32> to vector<8x32xf32>
    %5 = vector.broadcast %3 : vector<1x32xf32> to vector<8x32xf32>
    %6 = arith.mulf %4, %5 : vector<8x32xf32>
    %7 = vector.extract_strided_slice %0 {offsets = [0, 1], sizes = [8, 1], strides = [1, 1]} : vector<8x2xf32> to vector<8x1xf32>
    %8 = vector.extract_strided_slice %1 {offsets = [1, 0], sizes = [1, 32], strides = [1, 1]} : vector<2x32xf32> to vector<1x32xf32>
    %9 = vector.broadcast %7 : vector<8x1xf32> to vector<8x32xf32>
    %10 = vector.broadcast %8 : vector<1x32xf32> to vector<8x32xf32>
    %11 = arith.mulf %9, %10 : vector<8x32xf32>
    %12 = arith.addf %6, %11 : vector<8x32xf32>
    %c0_3 = arith.constant 0 : index
    %c0_4 = arith.constant 0 : index
    %13 = vector.load %arg2[%c0_3, %c0_4] : memref<1x32xf32, #tpu.memory_space<vmem>>, vector<1x32xf32>
    %14 = vector.broadcast %13 : vector<1x32xf32> to vector<8x32xf32>
    %15 = arith.addf %12, %14 : vector<8x32xf32>
    %c0_5 = arith.constant 0 : index
    %c0_6 = arith.constant 0 : index
    %16 = vector.load %arg3[%c0_5, %c0_6] : memref<8x32xf32, #tpu.memory_space<vmem>>, vector<8x32xf32>
    tpu.vector_store %arg3[%c0_5, %c0_6], %15 {strides = array<i32>} : memref<8x32xf32, #tpu.memory_space<vmem>>, vector<8x32xf32>,
    return
  }
}

</mosaic_0001>

<bundles_post_ra>
// kernel: tpu_custom_call.1
= control target key start
LH: loop header
LB: loop body
LE: loop exit
PB: predicated region body
PF: predicated region fallthrough
CT: control target
= control target key end

     0   :  { %v91_v1 = vmov 0   ;;  %s135_s0 = inlined_call_operand.vmem [shape: f32[8,2], index: 0, kind: input, shape index: {}]   ;;  %s136_s1 = inlined_call_operand.vmem [shape: f32[2,32], index: 1, kind: input, shape index: {}]   ;;  %s137_s2 = inlined_call_operand.vmem [shape: f32[1,32], index: 2, kind: input, shape index: {}]   ;;  %s138_s3 = inlined_call_operand.hbm [shape: f32[8,32], index: 3, kind: output, shape index: {}]  }
   0x1   :  { %v15_v0 = vld [vmem:[%s135_s0] sm:$0xff]  ;;  %65 = vset.pattern.permute.xlu0 %v91_v1 }
   0x2   :  { %8 = vsyncpa [#allocation3], 0  ;;  %19 = vperm.xlu0 %65, %v15_v0   ;;  %v92_v2 = vmov 1   ;;  %v22_v3 = vlaneseq  ;;  %v16_v7 = vld [vmem:[%s136_s1] sm:$0x3]  ;;  %s93_s17 = smov [#allocation2]  }
   0x3   :  { %v61_v14 = vld [vmem:[%s137_s2] ss:$0 sm:$0xff]  ;;  %s53_s18 = sshll.u32 %s93_s17, 4  ;;  %vm45_vm0 = vcmask 261120   ;;  %s54_s18 = int_to_ptr.vmem [resolvable:$true] %s53_s18 }
   0x4   :  { %v23_v4 = vshrl.u32 %v22_v3, 7  ;;  %s67_s19 = scalar_lea.vmem %s54_s18, 128  ;;  %p72_p1 = scmp.lt.s32.totalorder %s54_s18, %s54_s18 }
   0x5   :  { %p68_p0 = scmp.ne.s32.totalorder %s54_s18, %s67_s19  ;;  %p73_p2 = scmp.lt.s32.totalorder %s67_s19, %s67_s19 }
   0x6   :  { %66 = vset.pattern.permute.xlu0 %v92_v2  ;;  %v24_v5 = vsub.s32 0, %v23_v4  ;;  %v33_v6 = vsub.s32 1, %v23_v4 }
   0x7   :  { %28 = vperm.xlu0 %66, %v15_v0   ;;  %p74_p3 = por %p73_p2, %p72_p1 }
   0x8   :  { %v25_v9 = vrot.slane %v16_v7, %v24_v5  ;;  %v34_v10 = vrot.slane %v16_v7, %v33_v6 }
   0x9   :  { %p75_p4 = pnand %p74_p3, %p68_p0 }
  0x81   :  { %v20_v8 = vpop.permute.xlu0 %19 }
  0x82   :  { %v26_v12 = vmul.f32 %v25_v9, %v20_v8 }
  0x86   :  { %v29_v11 = vpop.permute.xlu0 %28 }
  0x87   :  { %v35_v13 = vmul.f32 %v34_v10, %v29_v11 }
  0x89   :  { %v36_v15 = vadd.f32 %v35_v13, %v26_v12 }
  0x8b   :  { %v44_v16 = vadd.f32 %v61_v14, %v36_v15 }
  0x8d   :  { %46 = vst.msk [vmem:[#allocation2] sm:$0xff] %vm45_vm0, %v44_v16 }
  0x8e   :  { %78 = shalt.err (!%p75_p4)
}
  0x8f   :  { %s79_s21 = scalar_lea.hbm %s138_s3, 128 }
  0x90   :  { %p80_p5 = scmp.ne.s32.totalorder %s138_s3, %s79_s21  ;;  %p83_p6 = scmp.lt.u32.totalorder %s79_s21, %s138_s3 }
  0x92   :  { %p85_p7 = pnand %p83_p6, %p80_p5 }
  0x94   :  { %88 = shalt.err (!%p85_p7)
}
  0x95   :  { %56 = dma.vmem_to_hbm [thread:$0]  %s54_s18, 128, %s138_s3, [#allocation3]  }
  0x96   :  { %89 = dma.done.wait [#allocation3], 128  }
  0x97   :  { %90 = vsyncadd [#allocation3], 4294967168 }
  0x98   :  { %60 = vsyncpa [#allocation3], 1 }

</bundles_post_ra>
